<compile_context>
chip_gen: v5e
topology: v5e:2x2
jax: 0.10.0
libtpu: 0.0.40
codegen_flags: <defaults>
</compile_context>

<pallas_src>
import jax
import jax.numpy as jnp
from jax import lax
from jax.experimental import pallas as pl
from jax.experimental.pallas import tpu as pltpu

LN_EPS = 1e-5


def _attn_pool_kernel(x_ref, w1_ref, b1_ref, w2_ref, g_ref, be_ref, o_ref):
    Bt, S, E = x_ref.shape
    Eh = w1_ref.shape[1]

    x = x_ref[...].astype(jnp.float32)                 # (Bt, S, E)

    # --- Linear(E -> E/2) + ReLU: single MXU matmul for the whole block ---
    x2 = x.reshape(Bt * S, E)
    h = jnp.dot(x2, w1_ref[...], preferred_element_type=jnp.float32)
    h = jnp.maximum(h + b1_ref[...], 0.0)              # (Bt*S, Eh)

    # --- Linear(E/2 -> 1) as a lane reduce (no N=1 MXU matmul) ---
    # keepdims puts the scores straight into the (Bt, S, 1) layout (S on
    # sublanes) needed to weight x later without any relayout.
    # b2 is omitted: it cancels exactly under the softmax.
    s = jnp.sum(h.reshape(Bt, S, Eh) * w2_ref[...], axis=-1, keepdims=True)

    # --- softmax over the sequence (sublane) axis ---
    s = s - jnp.max(s, axis=1, keepdims=True)
    p = jnp.exp(s)                                     # (Bt, S, 1)
    p = p * pl.reciprocal(jnp.sum(p, axis=1, keepdims=True), approx=True)

    # --- weighted sum over the sequence: VPU multiply + sublane reduce ---
    # (replaces the M=1 batched einsum; VALU/XLU slots have slack here)
    ctx = jnp.sum(p * x, axis=1)                       # (Bt, E)

    # --- LayerNorm over E (lane axis), biased variance, eps = 1e-5 ---
    mean = jnp.mean(ctx, axis=-1, keepdims=True)
    cen = ctx - mean
    var = jnp.mean(cen * cen, axis=-1, keepdims=True)
    out = cen * lax.rsqrt(var + LN_EPS) * g_ref[...] + be_ref[...]
    o_ref[...] = out.astype(o_ref.dtype)


def improved_attention_pooling(x, w1, b1, w2, b2, gamma, beta, *,
                               block_b=None, vmem_limit_bytes=None):
    """x: (B, S, E). Linear weights use the (in_dim, out_dim) convention.

    b2 is accepted for interface parity with the PyTorch module but unused:
    softmax is shift-invariant, so the second Linear's scalar bias cancels.
    If block_b is given, it must be a multiple of 8 (or >= B).
    """
    del b2
    B, S, E = x.shape
    Eh = w1.shape[1]

    # --- VMEM limit: derive from the chip, leave headroom (v7x has 64 MiB/TC).
    if vmem_limit_bytes is None:
        try:
            cap = int(pltpu.get_tpu_info().vmem_capacity_bytes)
        except Exception:
            cap = 64 << 20                    # conservative fallback (v7x per-TC)
        vmem_limit_bytes = min((cap * 3) // 4, 96 << 20)

    row_bytes = S * E * x.dtype.itemsize
    if block_b is None:
        # The x slab is double-buffered and the kernel keeps a few slab-sized
        # intermediates live (h, p*x, possible reshape copies), so budget the
        # slab at ~1/8 of the VMEM limit, capped at 8 MiB (already amortizes
        # the ~0.35 us/step overhead to a few percent on all generations).
        slab_budget = min(vmem_limit_bytes // 8, 8 << 20)
        bt = max(8, (slab_budget // row_bytes) // 8 * 8)
        if B >= 16:
            # Keep >= 2 parallel grid steps so v7x's two TensorCores both work.
            bt = min(bt, max(8, (pl.cdiv(B, 2) // 8) * 8))
    else:
        bt = block_b
    if bt >= B:
        bt = B                                # one full-batch block, no padding

    # Ragged last block (B % bt != 0) is handled by Pallas' masked writeback;
    # no wrapper-side jnp.pad (which would re-read/re-write all of x in HBM).
    grid_b = pl.cdiv(B, bt)

    b1_2d = b1.reshape(1, Eh)
    w2_row = w2.reshape(1, Eh)      # (Eh, 1) column -> (1, Eh) broadcast row
    g_2d = gamma.reshape(1, E)
    be_2d = beta.reshape(1, E)

    def full(shape):
        return pl.BlockSpec(shape, lambda b: (0,) * len(shape))

    out = pl.pallas_call(
        _attn_pool_kernel,
        out_shape=jax.ShapeDtypeStruct((B, E), x.dtype),
        grid_spec=pltpu.PrefetchScalarGridSpec(
            num_scalar_prefetch=0,
            grid=(grid_b,),
            in_specs=[
                pl.BlockSpec((bt, S, E), lambda b: (b, 0, 0)),   # x slab
                full((E, Eh)),                                    # W1
                full((1, Eh)),                                    # b1
                full((1, Eh)),                                    # W2 row
                full((1, E)),                                     # gamma
                full((1, E)),                                     # beta
            ],
            out_specs=pl.BlockSpec((bt, E), lambda b: (b, 0)),
        ),
        compiler_params=pltpu.CompilerParams(
            dimension_semantics=("parallel",),
            vmem_limit_bytes=vmem_limit_bytes,
        ),
    )(x, w1, b1_2d, w2_row, g_2d, be_2d)

    return out


def _reference(x, w1, b1, w2, b2, gamma, beta):
    h = jnp.maximum(x @ w1 + b1, 0.0)
    s = h @ w2 + b2                                  # (B, S, 1)
    p = jax.nn.softmax(s, axis=1)
    ctx = jnp.sum(p * x, axis=1)                     # (B, E)
    mean = jnp.mean(ctx, axis=-1, keepdims=True)
    var = jnp.mean((ctx - mean) ** 2, axis=-1, keepdims=True)
    return (ctx - mean) * lax.rsqrt(var + LN_EPS) * gamma + beta


def _make_params(key, E):
    Eh = E // 2
    k1, k2, k3, k4, k5, k6 = jax.random.split(key, 6)
    w1 = jax.random.normal(k1, (E, Eh), dtype=jnp.float32) * (1.0 / jnp.sqrt(E))
    b1 = jax.random.normal(k2, (Eh,), dtype=jnp.float32) * 0.01
    w2 = jax.random.normal(k3, (Eh, 1), dtype=jnp.float32) * (1.0 / jnp.sqrt(Eh))
    b2 = jax.random.normal(k4, (1,), dtype=jnp.float32) * 0.01
    gamma = 1.0 + 0.1 * jax.random.normal(k5, (E,), dtype=jnp.float32)
    beta = 0.01 * jax.random.normal(k6, (E,), dtype=jnp.float32)
    return w1, b1, w2, b2, gamma, beta


if __name__ == "__main__":
    key = jax.random.PRNGKey(0)
    kp, kx1, kx2 = jax.random.split(key, 3)

    # --- small shape matching the module spec: (batch=2, seq=8, embed=32) ---
    B, S, E = 2, 8, 32
    w1, b1, w2, b2, gamma, beta = _make_params(kp, E)
    x = jax.random.normal(kx1, (B, S, E), dtype=jnp.float32)

    out = improved_attention_pooling(x, w1, b1, w2, b2, gamma, beta)
    out = jax.block_until_ready(out)
    ref = _reference(x, w1, b1, w2, b2, gamma, beta)
    assert out.shape == (B, E)
    assert jnp.allclose(out, ref, atol=1e-4, rtol=1e-4), "mismatch vs reference"

    # --- ragged batch: exercises cdiv grid + masked writeback (no jnp.pad) ---
    B2 = 13
    x2 = jax.random.normal(kx2, (B2, S, E), dtype=jnp.float32)
    out2 = improved_attention_pooling(x2, w1, b1, w2, b2, gamma, beta, block_b=8)
    out2 = jax.block_until_ready(out2)
    ref2 = _reference(x2, w1, b1, w2, b2, gamma, beta)
    assert out2.shape == (B2, E)
    assert jnp.allclose(out2, ref2, atol=1e-4, rtol=1e-4), "ragged-batch mismatch"

    print("KERNEL_OK")
</pallas_src>

<mosaic_0001>
module attributes {stable_mosaic.version = 11 : i64} {
  func.func @_attn_pool_kernel(%arg0: i32, %arg1: memref<2x8x32xf32, #tpu.memory_space<vmem>>, %arg2: memref<32x16xf32, #tpu.memory_space<vmem>>, %arg3: memref<1x16xf32, #tpu.memory_space<vmem>>, %arg4: memref<1x16xf32, #tpu.memory_space<vmem>>, %arg5: memref<1x32xf32, #tpu.memory_space<vmem>>, %arg6: memref<1x32xf32, #tpu.memory_space<vmem>>, %arg7: memref<2x32xf32, #tpu.memory_space<vmem>>) attributes {dimension_semantics = [#tpu.dimension_semantics<parallel>], iteration_bounds = array<i64: 1>, scalar_prefetch = 0 : i64, scratch_operands = 0 : i64, tpu.core_type = #tpu.core_type<tc>, window_params = [{transform_indices = @transform_0, window_bounds = array<i64: 2, 8, 32>}, {pipeline_mode = #tpu.pipeline_mode<synchronous>, transform_indices = @transform_1, window_bounds = array<i64: 32, 16>}, {pipeline_mode = #tpu.pipeline_mode<synchronous>, transform_indices = @transform_2, window_bounds = array<i64: 1, 16>}, {pipeline_mode = #tpu.pipeline_mode<synchronous>, transform_indices = @transform_3, window_bounds = array<i64: 1, 16>}, {pipeline_mode = #tpu.pipeline_mode<synchronous>, transform_indices = @transform_4, window_bounds = array<i64: 1, 32>}, {pipeline_mode = #tpu.pipeline_mode<synchronous>, transform_indices = @transform_5, window_bounds = array<i64: 1, 32>}, {transform_indices = @transform_6, window_bounds = array<i64: 2, 32>}]} {
    %c0 = arith.constant 0 : index
    %c0_0 = arith.constant 0 : index
    %c0_1 = arith.constant 0 : index
    %0 = vector.load %arg1[%c0, %c0_0, %c0_1] : memref<2x8x32xf32, #tpu.memory_space<vmem>>, vector<2x8x32xf32>
    %1 = vector.shape_cast %0 : vector<2x8x32xf32> to vector<16x32xf32>
    %c0_2 = arith.constant 0 : index
    %c0_3 = arith.constant 0 : index
    %2 = vector.load %arg2[%c0_2, %c0_3] : memref<32x16xf32, #tpu.memory_space<vmem>>, vector<32x16xf32>
    %cst = arith.constant dense<0.000000e+00> : vector<16x16xf32>
    %3 = tpu.matmul %1, %2, %cst {dimension_numbers = #tpu.dot_dimension_numbers<[1], [0], [0], [1], [0, 0, 1, 1], [], []>} : vector<16x32xf32>, vector<32x16xf32>, vector<16x16xf32> -> vector<16x16xf32>
    %c0_4 = arith.constant 0 : index
    %c0_5 = arith.constant 0 : index
    %4 = vector.load %arg3[%c0_4, %c0_5] : memref<1x16xf32, #tpu.memory_space<vmem>>, vector<1x16xf32>
    %5 = vector.broadcast %4 : vector<1x16xf32> to vector<16x16xf32>
    %6 = arith.addf %3, %5 : vector<16x16xf32>
    %cst_6 = arith.constant 0.000000e+00 : f32
    %7 = vector.broadcast %cst_6 : f32 to vector<16x16xf32>
    %8 = arith.maximumf %6, %7 : vector<16x16xf32>
    %9 = vector.shape_cast %8 : vector<16x16xf32> to vector<2x8x16xf32>
    %c0_7 = arith.constant 0 : index
    %c0_8 = arith.constant 0 : index
    %10 = vector.load %arg4[%c0_7, %c0_8] : memref<1x16xf32, #tpu.memory_space<vmem>>, vector<1x16xf32>
    %11 = vector.shape_cast %10 : vector<1x16xf32> to vector<1x1x16xf32>
    %12 = vector.broadcast %11 : vector<1x1x16xf32> to vector<2x8x16xf32>
    %13 = arith.mulf %9, %12 : vector<2x8x16xf32>
    %cst_9 = arith.constant dense<0.000000e+00> : vector<2x8xf32>
    %14 = vector.multi_reduction <add>, %13, %cst_9 [2] : vector<2x8x16xf32> to vector<2x8xf32>
    %15 = vector.shape_cast %14 : vector<2x8xf32> to vector<2x8x1xf32>
    %cst_10 = arith.constant dense<0xFF800000> : vector<2x1xf32>
    %16 = vector.multi_reduction <maximumf>, %15, %cst_10 [1] : vector<2x8x1xf32> to vector<2x1xf32>
    %17 = vector.shape_cast %16 : vector<2x1xf32> to vector<2x1x1xf32>
    %18 = vector.broadcast %17 : vector<2x1x1xf32> to vector<2x8x1xf32>
    %19 = arith.subf %15, %18 : vector<2x8x1xf32>
    %20 = math.exp %19 : vector<2x8x1xf32>
    %cst_11 = arith.constant dense<0.000000e+00> : vector<2x1xf32>
    %21 = vector.multi_reduction <add>, %20, %cst_11 [1] : vector<2x8x1xf32> to vector<2x1xf32>
    %22 = vector.shape_cast %21 : vector<2x1xf32> to vector<2x1x1xf32>
    %23 = tpu.reciprocal %22 {approx = true} : vector<2x1x1xf32> -> vector<2x1x1xf32>
    %24 = vector.broadcast %23 : vector<2x1x1xf32> to vector<2x8x1xf32>
    %25 = arith.mulf %20, %24 : vector<2x8x1xf32>
    %26 = vector.broadcast %25 : vector<2x8x1xf32> to vector<2x8x32xf32>
    %27 = arith.mulf %26, %0 : vector<2x8x32xf32>
    %cst_12 = arith.constant dense<0.000000e+00> : vector<2x32xf32>
    %28 = vector.multi_reduction <add>, %27, %cst_12 [1] : vector<2x8x32xf32> to vector<2x32xf32>
    %cst_13 = arith.constant dense<0.000000e+00> : vector<2xf32>
    %29 = vector.multi_reduction <add>, %28, %cst_13 [1] : vector<2x32xf32> to vector<2xf32>
    %30 = vector.shape_cast %29 : vector<2xf32> to vector<2x1xf32>
    %cst_14 = arith.constant 3.200000e+01 : f32
    %31 = vector.broadcast %cst_14 : f32 to vector<2x1xf32>
    %32 = arith.divf %30, %31 : vector<2x1xf32>
    %33 = vector.broadcast %32 : vector<2x1xf32> to vector<2x32xf32>
    %34 = arith.subf %28, %33 : vector<2x32xf32>
    %35 = arith.mulf %34, %34 : vector<2x32xf32>
    %cst_15 = arith.constant dense<0.000000e+00> : vector<2xf32>
    %36 = vector.multi_reduction <add>, %35, %cst_15 [1] : vector<2x32xf32> to vector<2xf32>
    %37 = vector.shape_cast %36 : vector<2xf32> to vector<2x1xf32>
    %cst_16 = arith.constant 3.200000e+01 : f32
    %38 = vector.broadcast %cst_16 : f32 to vector<2x1xf32>
    %39 = arith.divf %37, %38 : vector<2x1xf32>
    %cst_17 = arith.constant 9.99999974E-6 : f32
    %40 = vector.broadcast %cst_17 : f32 to vector<2x1xf32>
    %41 = arith.addf %39, %40 : vector<2x1xf32>
    %42 = math.rsqrt %41 : vector<2x1xf32>
    %43 = vector.broadcast %42 : vector<2x1xf32> to vector<2x32xf32>
    %44 = arith.mulf %34, %43 : vector<2x32xf32>
    %c0_18 = arith.constant 0 : index
    %c0_19 = arith.constant 0 : index
    %45 = vector.load %arg5[%c0_18, %c0_19] : memref<1x32xf32, #tpu.memory_space<vmem>>, vector<1x32xf32>
    %46 = vector.broadcast %45 : vector<1x32xf32> to vector<2x32xf32>
    %47 = arith.mulf %44, %46 : vector<2x32xf32>
    %c0_20 = arith.constant 0 : index
    %c0_21 = arith.constant 0 : index
    %48 = vector.load %arg6[%c0_20, %c0_21] : memref<1x32xf32, #tpu.memory_space<vmem>>, vector<1x32xf32>
    %49 = vector.broadcast %48 : vector<1x32xf32> to vector<2x32xf32>
    %50 = arith.addf %47, %49 : vector<2x32xf32>
    %c0_22 = arith.constant 0 : index
    %c0_23 = arith.constant 0 : index
    %51 = vector.load %arg7[%c0_22, %c0_23] : memref<2x32xf32, #tpu.memory_space<vmem>>, vector<2x32xf32>
    tpu.vector_store %arg7[%c0_22, %c0_23], %50 {strides = array<i32>} : memref<2x32xf32, #tpu.memory_space<vmem>>, vector<2x32xf32>,
    return
  }
  func.func @transform_0(%arg0: i32) -> (i32, i32, i32) {
    %c0_i32 = arith.constant 0 : i32
    %c0_i32_0 = arith.constant 0 : i32
    %c0_i32_1 = arith.constant 0 : i32
    return %arg0, %c0_i32, %c0_i32_0 : i32, i32, i32
  }
  func.func @transform_1(%arg0: i32) -> (i32, i32) {
    %c0_i32 = arith.constant 0 : i32
    %c0_i32_0 = arith.constant 0 : i32
    %c0_i32_1 = arith.constant 0 : i32
    return %c0_i32, %c0_i32_0 : i32, i32
  }
  func.func @transform_2(%arg0: i32) -> (i32, i32) {
    %c0_i32 = arith.constant 0 : i32
    %c0_i32_0 = arith.constant 0 : i32
    %c0_i32_1 = arith.constant 0 : i32
    return %c0_i32, %c0_i32_0 : i32, i32
  }
  func.func @transform_3(%arg0: i32) -> (i32, i32) {
    %c0_i32 = arith.constant 0 : i32
    %c0_i32_0 = arith.constant 0 : i32
    %c0_i32_1 = arith.constant 0 : i32
    return %c0_i32, %c0_i32_0 : i32, i32
  }
  func.func @transform_4(%arg0: i32) -> (i32, i32) {
    %c0_i32 = arith.constant 0 : i32
    %c0_i32_0 = arith.constant 0 : i32
    %c0_i32_1 = arith.constant 0 : i32
    return %c0_i32, %c0_i32_0 : i32, i32
  }
  func.func @transform_5(%arg0: i32) -> (i32, i32) {
    %c0_i32 = arith.constant 0 : i32
    %c0_i32_0 = arith.constant 0 : i32
    %c0_i32_1 = arith.constant 0 : i32
    return %c0_i32, %c0_i32_0 : i32, i32
  }
  func.func @transform_6(%arg0: i32) -> (i32, i32) {
    %c0_i32 = arith.constant 0 : i32
    %c0_i32_0 = arith.constant 0 : i32
    return %arg0, %c0_i32 : i32, i32
  }
}

</mosaic_0001>

<bundles_post_ra>
// kernel: tpu_custom_call.1
= control target key start
LH: loop header
LB: loop body
LE: loop exit
PB: predicated region body
PF: predicated region fallthrough
CT: control target
= control target key end

     0   :  { %s348_s0 = inlined_call_operand.vmem [shape: f32[2,8,32], index: 0, kind: input, shape index: {}]   ;;  %s349_s1 = inlined_call_operand.vmem [shape: f32[32,16], index: 1, kind: input, shape index: {}]   ;;  %s350_s2 = inlined_call_operand.vmem [shape: f32[1,16], index: 2, kind: input, shape index: {}]   ;;  %s351_s3 = inlined_call_operand.vmem [shape: f32[1,16], index: 3, kind: input, shape index: {}]   ;;  %s352_s4 = inlined_call_operand.vmem [shape: f32[1,32], index: 4, kind: input, shape index: {}]   ;;  %s353_s5 = inlined_call_operand.vmem [shape: f32[1,32], index: 5, kind: input, shape index: {}]   ;;  %s354_s6 = inlined_call_operand.hbm [shape: f32[2,32], index: 6, kind: output, shape index: {}]  }
   0x1   :  { %v29_v0 = vld [vmem:[%s349_s1 + $0x18] sm:$0xff]  ;;  %v28_v1 = vld [vmem:[%s349_s1 + $0x10] sm:$0xff]  ;;  %v27_v2 = vld [vmem:[%s349_s1 + $0x8] sm:$0xff] }
   0x2   :  { %53 = vmatpush.msra.mxu0 %v29_v0  ;;  %216 = vmatpush.msra.mxu1 %v29_v0 }
   0x4   :  { %54 = vmatpush.msra.mxu0 %v28_v1  ;;  %217 = vmatpush.msra.mxu1 %v28_v1 }
   0x5   :  { %11 = vsyncpa [#allocation3], 0  ;;  %v26_v3 = vld [vmem:[%s349_s1] sm:$0xff]  ;;  %vm34_vm0 = vcmask 261120   ;;  %v319_v5 = vld [vmem:[%s348_s0 + $0x8] sm:$0xff]  ;;  %vm72_vm1 = vcmask 130048  }
   0x6   :  { %55 = vmatpush.msra.mxu0 %v27_v2  ;;  %v24_v4 = vld [vmem:[%s348_s0] sm:$0xff]  ;;  %218 = vmatpush.msra.mxu1 %v27_v2  ;;  %vm131_vm2 = vcmask 1041409   ;;  %vm134_vm3 = vcmask 254976   ;;  %s265_s13 = smov [#allocation2]   ;;  %s205_s17 = sshll.u32 %s354_s6, 4  ;;  %s206_s17 = int_to_ptr.hbm [resolvable:$true] %s205_s17 }
   0x7   :  { %v222_v6 = vld [vmem:[%s350_s2] ss:$0 sm:$0xff]  ;;  %s203_s14 = sshll.u32 %s265_s13, 4  ;;  %s204_s14 = int_to_ptr.vmem [resolvable:$true] %s203_s14 }
   0x8   :  { %56 = vmatpush.msra.mxu0 %v26_v3  ;;  %219 = vmatpush.msra.mxu1 %v26_v3  ;;  %v223_v11 = vld [vmem:[%s351_s3] ss:$0 sm:$0xff] }
   0x9   :  { %214 = vmatmul.msk.f32.vlgmr.msra.gmra.mxu0 %vm34_vm0, %v24_v4  ;;  %215 = vmatmul.msk.f32.vlgmr.msra.gmra.mxu1 %vm34_vm0, %v319_v5 }
  0x86   :  { %v58_v7 = vpop.f32.mrf.mxu0  ;;  %v61_v8 = vpop.f32.mrf.mxu1 }
  0x87   :  { %v59_v9 = vadd.f32 %v222_v6, %v58_v7  ;;  %v62_v10 = vadd.f32 %v222_v6, %v61_v8 }
  0x89   :  { %v64_v12 = vmax.f32 %v59_v9, 0.0  ;;  %v65_v13 = vmax.f32 %v62_v10, 0.0 }
  0x8b   :  { %v70_v14 = vmul.f32 %v223_v11, %v64_v12  ;;  %v71_v16 = vmul.f32 %v223_v11, %v65_v13 }
  0x8d   :  { %v73_v15 = vsel %vm72_vm1, %v70_v14, 0.0  ;;  %v76_v17 = vsel %vm72_vm1, %v71_v16, 0.0 }
  0x8e   :  { %74 = vadd.xlane.f32.xlu0 %v73_v15 }
  0x96   :  { %77 = vadd.xlane.f32.xlu0 %v76_v17 }
 0x101   :  { %v75_v18 = vpop.xlane.xlu0 %74 }
 0x102   :  { %v79_v19 = vrot.slane %v75_v18, 4 }
 0x104   :  { %v80_v20 = vmax.f32 %v75_v18, %v79_v19 }
 0x106   :  { %v81_v21 = vrot.slane %v80_v20, 2 }
 0x108   :  { %v82_v22 = vmax.f32 %v80_v20, %v81_v21 }
 0x109   :  { %v78_v23 = vpop.xlane.xlu0 %77 }
 0x10a   :  { %v83_v24 = vrot.slane %v82_v22, 1  ;;  %v85_v25 = vrot.slane %v78_v23, 4 }
 0x10c   :  { %v84_v26 = vmax.f32 %v82_v22, %v83_v24  ;;  %v86_v27 = vmax.f32 %v78_v23, %v85_v25 }
 0x10e   :  { %v91_v28 = vsub.f32 %v75_v18, %v84_v26  ;;  %v87_v29 = vrot.slane %v86_v27, 2 }
 0x110   :  { %v93_v30 = vmul.f32 1.442695, %v91_v28  ;;  %v88_v31 = vmax.f32 %v86_v27, %v87_v29 }
 0x112   :  { %226 = vpow2.f32 %v93_v30  ;;  %v89_v32 = vrot.slane %v88_v31, 1 }
 0x114   :  { %v90_v33 = vmax.f32 %v88_v31, %v89_v32 }
 0x116   :  { %v92_v34 = vsub.f32 %v78_v23, %v90_v33 }
 0x118   :  { %v227_v35 = vpop.eup %226  ;;  %v95_v36 = vmul.f32 1.442695, %v92_v34 }
 0x119   :  { %v97_v37 = vrot.slane %v227_v35, 4 }
 0x11a   :  { %228 = vpow2.f32 %v95_v36 }
 0x11b   :  { %v98_v38 = vadd.f32 %v227_v35, %v97_v37  ;;  %v224_v37 = vld [vmem:[%s352_s4] ss:$0 sm:$0xff] }
 0x11d   :  { %v99_v39 = vrot.slane %v98_v38, 2 }
 0x11f   :  { %v100_v40 = vadd.f32 %v99_v39, %v98_v38 }
 0x120   :  { %v229_v41 = vpop.eup %228 }
 0x121   :  { %v103_v42 = vrot.slane %v229_v41, 4  ;;  %v101_v43 = vrot.slane %v100_v40, 1 }
 0x123   :  { %v104_v44 = vadd.f32 %v229_v41, %v103_v42  ;;  %v102_v45 = vadd.f32 %v101_v43, %v100_v40 }
 0x125   :  { %v105_v46 = vrot.slane %v104_v44, 2  ;;  %230 = vrcp.f32 %v102_v45 }
 0x127   :  { %v106_v47 = vadd.f32 %v105_v46, %v104_v44 }
 0x129   :  { %v107_v48 = vrot.slane %v106_v47, 1 }
 0x12b   :  { %v231_v49 = vpop.eup %230  ;;  %v108_v50 = vadd.f32 %v107_v48, %v106_v47 }
 0x12c   :  { %v111_v51 = vmul.f32 %v231_v49, %v227_v35 }
 0x12d   :  { %232 = vrcp.f32 %v108_v50 }
 0x12e   :  { %v113_v52 = vmul.f32 %v111_v51, %v24_v4 }
 0x130   :  { %v115_v53 = vsel %vm34_vm0, %v113_v52, 0.0 }
 0x131   :  { %v116_v54 = vrot.slane %v115_v53, 4 }
 0x133   :  { %v233_v55 = vpop.eup %232  ;;  %v117_v56 = vadd.f32 %v116_v54, %v115_v53 }
 0x134   :  { %v112_v57 = vmul.f32 %v233_v55, %v229_v41  ;;  %v225_v41 = vld [vmem:[%s353_s5] ss:$0 sm:$0xff] }
 0x135   :  { %v118_v59 = vrot.slane %v117_v56, 2 }
 0x136   :  { %v114_v58 = vmul.f32 %v112_v57, %v319_v5  ;;  %v264_v5 = vmov 32.0  }
 0x137   :  { %v119_v62 = vadd.f32 %v118_v59, %v117_v56  ;;  %234 = vrcp.f32 %v264_v5 }
 0x138   :  { %v122_v60 = vsel %vm34_vm0, %v114_v58, 0.0 }
 0x139   :  { %v123_v61 = vrot.slane %v122_v60, 4  ;;  %v120_v1 = vrot.slane %v119_v62, 1 }
 0x13b   :  { %v124_v63 = vadd.f32 %v123_v61, %v122_v60  ;;  %v121_v4 = vadd.f32 %v120_v1, %v119_v62 }
 0x13d   :  { %v125_v0 = vrot.slane %v124_v63, 2  ;;  %v235_v9 = vpop.eup %234 }
 0x13e   :  { %v139_v10 = vmul.f32 32.0, %v235_v9  ;;  %vm143_vm4 = vweird.f32 %v235_v9 }
 0x13f   :  { %v126_v2 = vadd.f32 %v125_v0, %v124_v63 }
 0x140   :  { %v140_v11 = vsub.f32 1.0, %v139_v10 }
 0x141   :  { %v127_v3 = vrot.slane %v126_v2, 1 }
 0x142   :  { %v141_v12 = vmul.f32 %v235_v9, %v140_v11 }
 0x143   :  { %v128_v6 = vadd.f32 %v127_v3, %v126_v2 }
 0x144   :  { %v142_v13 = vadd.f32 %v235_v9, %v141_v12 }
 0x145   :  { %v132_v7 = vsel %vm131_vm2, %v128_v6, %v121_v4 }
 0x146   :  { %v135_v8 = vsel %vm134_vm3, %v132_v7, 0.0  ;;  %v144_v14 = vsel %vm143_vm4, %v235_v9, %v142_v13 }
 0x147   :  { %136 = vadd.xlane.f32.xlu1 %v135_v8 }
 0x1ba   :  { %v137_v15 = vpop.xlane.xlu1 %136 }
 0x1bb   :  { %v145_v16 = vmul.f32 %v144_v14, %v137_v15 }
 0x1bd   :  { %v147_v17 = vrot.slane %v145_v16, 1  ;;  %v150_v18 = vsub.f32 %v121_v4, %v145_v16 }
 0x1bf   :  { %v151_v19 = vsub.f32 %v128_v6, %v147_v17  ;;  %v152_v21 = vmul.f32 %v150_v18, %v150_v18 }
 0x1c1   :  { %v153_v20 = vmul.f32 %v151_v19, %v151_v19 }
 0x1c3   :  { %v156_v22 = vrot.slane %v153_v20, 7 }
 0x1c5   :  { %v157_v23 = vsel %vm131_vm2, %v156_v22, %v152_v21 }
 0x1c6   :  { %v159_v24 = vsel %vm134_vm3, %v157_v23, 0.0 }
 0x1c7   :  { %160 = vadd.xlane.f32.xlu1 %v159_v24 }
 0x23a   :  { %v161_v25 = vpop.xlane.xlu1 %160 }
 0x23b   :  { %v162_v26 = vmul.f32 %v161_v25, %v144_v14 }
 0x23d   :  { %v163_v27 = vadd.f32 1e-05, %v162_v26 }
 0x23f   :  { %236 = vrsqrt.f32 %v163_v27  ;;  %vm170_vm6 = vweird.f32 %v163_v27 }
 0x245   :  { %v237_v28 = vpop.eup %236 }
 0x246   :  { %v165_v29 = vmul.f32 %v237_v28, %v163_v27  ;;  %vm171_vm5 = vweird.f32 %v237_v28 }
 0x247   :  { %vm172_vm7 = vmor %vm170_vm6, %vm171_vm5 }
 0x248   :  { %v166_v30 = vmul.f32 %v237_v28, %v165_v29 }
 0x24a   :  { %v167_v31 = vmul.f32 0.5, %v166_v30 }
 0x24c   :  { %v168_v32 = vsub.f32 1.5, %v167_v31 }
 0x24e   :  { %v169_v33 = vmul.f32 %v237_v28, %v168_v32 }
 0x250   :  { %v173_v34 = vsel %vm172_vm7, %v237_v28, %v169_v33 }
 0x251   :  { %v175_v35 = vrot.slane %v173_v34, 1  ;;  %v178_v36 = vmul.f32 %v173_v34, %v150_v18 }
 0x253   :  { %v179_v38 = vmul.f32 %v175_v35, %v151_v19  ;;  %v184_v39 = vmul.f32 %v224_v37, %v178_v36 }
 0x255   :  { %v185_v40 = vmul.f32 %v224_v37, %v179_v38  ;;  %v190_v43 = vadd.f32 %v225_v41, %v184_v39 }
 0x257   :  { %v191_v42 = vadd.f32 %v225_v41, %v185_v40 }
 0x259   :  { %v194_v44 = vrot.slane %v191_v42, 7 }
 0x25b   :  { %v195_v45 = vsel %vm131_vm2, %v194_v44, %v190_v43 }
 0x25c   :  { %197 = vst.msk [vmem:[#allocation2] sm:$0x3] %vm134_vm3, %v195_v45 }
 0x25d   :  { %208 = dma.vmem_to_hbm [thread:$0]  %s204_s14, 32, %s206_s17, [#allocation3]  }
 0x25e   :  { %262 = dma.done.wait [#allocation3], 32  }
 0x25f   :  { %263 = vsyncadd [#allocation3], 4294967264 }
 0x260   :  { %213 = vsyncpa [#allocation3], 1 }

</bundles_post_ra>
